<compile_context>
chip_gen: v5e
topology: v5e:2x2
jax: 0.10.0
libtpu: 0.0.40
codegen_flags: <defaults>
</compile_context>

<pallas_src>
import functools

import jax
import jax.numpy as jnp
from jax.experimental import pallas as pl
from jax.experimental.pallas import tpu as pltpu

LANE = 128
SUBLANE = 8
NEG_BIG = -1e30  # bias/mask for non-action lanes -> exp underflows to exactly 0


def _round_up(n, m):
    return ((n + m - 1) // m) * m


def _cdiv(a, b):
    return (a + b - 1) // b


def _actor_critic_kernel(x_ref, w1_ref, b1_ref, wh_ref, bh_ref, out_ref):
    # Shared trunk: h = relu(x @ W1 + b1)   -> (TB, HP), f32 accumulation on MXU.
    x = x_ref[...]
    h = jnp.dot(x, w1_ref[...], preferred_element_type=jnp.float32) + b1_ref[...]
    h = jnp.maximum(h, 0.0)

    # Fused heads: one MXU pass, one (TB, AP) lane-dense output tile.
    #   lanes [0, A)      : real policy logits
    #   lanes [A, AP-1)   : padding (zero weights, -1e30 bias)
    #   lane  AP-1        : value head (zero weights elsewhere)
    z = jnp.dot(h, wh_ref[...], preferred_element_type=jnp.float32) + bh_ref[...]

    ap = z.shape[-1]
    lane = jax.lax.broadcasted_iota(jnp.int32, z.shape, dimension=1)
    is_value_lane = lane == (ap - 1)

    # Numerically stable softmax over the action lanes only (value lane masked out).
    logits = jnp.where(is_value_lane, NEG_BIG, z)
    m = jnp.max(logits, axis=-1, keepdims=True)
    e = jnp.exp(logits - m)                      # padded + value lanes -> exactly 0
    denom = jnp.sum(e, axis=-1, keepdims=True)
    probs = e / denom                            # exact division: rows sum to 1 (ULPs)

    # Single fused store: probs in action lanes, raw value in the last lane.
    out_ref[...] = jnp.where(is_value_lane, z, probs).astype(out_ref.dtype)


def make_actor_critic_params(w1, b1, wp, bp, wv, bv):
    """Pack PyTorch-layout params (weights (out, in), 1-D biases) into the padded,
    pre-transposed, head-fused layout the kernel expects. Done once, off the hot path."""
    w1 = jnp.asarray(w1, jnp.float32); b1 = jnp.asarray(b1, jnp.float32)
    wp = jnp.asarray(wp, jnp.float32); bp = jnp.asarray(bp, jnp.float32)
    wv = jnp.asarray(wv, jnp.float32); bv = jnp.asarray(bv, jnp.float32)

    H, S = w1.shape
    A, H2 = wp.shape
    assert H2 == H and wv.shape == (1, H)
    assert b1.shape == (H,) and bp.shape == (A,) and bv.shape == (1,)

    HP = _round_up(H, LANE)        # hidden padded to lane width
    AP = _round_up(A + 1, LANE)    # actions + 1 value lane, padded to lane width

    w1_t = jnp.zeros((S, HP), jnp.float32).at[:, :H].set(w1.T)
    b1_p = jnp.zeros((1, HP), jnp.float32).at[0, :H].set(b1)

    # Fused head weights/bias: policy columns + value column in the last lane.
    wh = jnp.zeros((HP, AP), jnp.float32)
    wh = wh.at[:H, :A].set(wp.T)
    wh = wh.at[:H, AP - 1].set(wv[0])
    bh = jnp.full((1, AP), NEG_BIG, jnp.float32)
    bh = bh.at[0, :A].set(bp)
    bh = bh.at[0, AP - 1].set(bv[0])

    return (w1_t, b1_p, wh, bh)


def _choose_batch_tile(B, block_b):
    """Adaptive batch tile: padding bounded by a few sublane rows, and >= 2 grid
    steps (when the batch allows) so v7x's two TensorCores both get work."""
    n_steps = max(_cdiv(B, block_b), 1)
    if n_steps == 1 and B >= 2 * SUBLANE:
        n_steps = 2
    TB = _round_up(_cdiv(B, n_steps), SUBLANE)
    Bp = _round_up(B, TB)
    return TB, Bp


@functools.partial(jax.jit, static_argnames=("action_num", "block_b"))
def actor_critic_forward(x, params, *, action_num, block_b=2048):
    """x: (B, state_sz) f32 -> (probs (B, action_num) f32, value (B, 1) f32)."""
    w1_t, b1_p, wh, bh = params
    B, S = x.shape
    HP = w1_t.shape[1]
    AP = wh.shape[1]

    TB, Bp = _choose_batch_tile(B, block_b)
    if Bp != B:
        x = jnp.pad(x, ((0, Bp - B), (0, 0)))

    cost = pl.CostEstimate(
        flops=2 * Bp * S * HP + 2 * Bp * HP * AP,
        transcendentals=Bp * AP,
        bytes_accessed=4 * (Bp * S + S * HP + HP + HP * AP + AP + Bp * AP),
    )

    out = pl.pallas_call(
        _actor_critic_kernel,
        out_shape=jax.ShapeDtypeStruct((Bp, AP), jnp.float32),
        grid=(Bp // TB,),
        in_specs=[
            pl.BlockSpec((TB, S), lambda i: (i, 0)),    # x: streamed over batch tiles
            pl.BlockSpec((S, HP), lambda i: (0, 0)),    # weights/biases: VMEM-resident
            pl.BlockSpec((1, HP), lambda i: (0, 0)),
            pl.BlockSpec((HP, AP), lambda i: (0, 0)),
            pl.BlockSpec((1, AP), lambda i: (0, 0)),
        ],
        out_specs=pl.BlockSpec((TB, AP), lambda i: (i, 0)),  # single lane-dense store
        compiler_params=pltpu.CompilerParams(
            # Batch tiles are independent -> shard across TensorCores on v7x;
            # no-op on single-TC v5e/v6e.
            dimension_semantics=("parallel",),
        ),
        cost_estimate=cost,
    )(x, w1_t, b1_p, wh, bh)

    # Slice away batch padding; split the fused tile into (probs, value).
    return out[:B, :action_num], out[:B, AP - 1:AP]


if __name__ == "__main__":
    # Small shapes consistent with the module: batch=8, state_sz=16,
    # hidden_size=64 (module default), 6 discrete actions.
    B, S, H, A = 8, 16, 64, 6

    key = jax.random.PRNGKey(0)
    k = jax.random.split(key, 7)

    def linear_init(kw, kb, fan_out, fan_in):
        # Mimic nn.Linear uniform(-1/sqrt(fan_in), 1/sqrt(fan_in)) init.
        bound = 1.0 / jnp.sqrt(jnp.float32(fan_in))
        w = jax.random.uniform(kw, (fan_out, fan_in), jnp.float32, -bound, bound)
        b = jax.random.uniform(kb, (fan_out,), jnp.float32, -bound, bound)
        return w, b

    w1, b1 = linear_init(k[0], k[1], H, S)   # affine1
    wp, bp = linear_init(k[2], k[3], A, H)   # DiscretePolicy._policy
    wv, bv = linear_init(k[4], k[5], 1, H)   # value
    x = jax.random.normal(k[6], (B, S), jnp.float32)

    params = make_actor_critic_params(w1, b1, wp, bp, wv, bv)
    probs, value = actor_critic_forward(x, params, action_num=A)
    probs, value = jax.block_until_ready((probs, value))

    # Pure-JAX reference of the PyTorch forward pass (highest precision so the
    # reference itself is not the source of error on real TPUs).
    h_ref = jnp.maximum(jnp.dot(x, w1.T, precision="highest") + b1, 0.0)
    logits_ref = jnp.dot(h_ref, wp.T, precision="highest") + bp
    probs_ref = jax.nn.softmax(logits_ref, axis=-1)
    value_ref = jnp.dot(h_ref, wv.T, precision="highest") + bv

    assert probs.shape == (B, A) and value.shape == (B, 1)
    assert jnp.allclose(probs, probs_ref, atol=1e-3, rtol=1e-3), \
        float(jnp.max(jnp.abs(probs - probs_ref)))
    # Exact division in the kernel -> rows are normalized to within a few ULPs.
    assert jnp.allclose(jnp.sum(probs, axis=-1), 1.0, atol=1e-5), \
        float(jnp.max(jnp.abs(jnp.sum(probs, axis=-1) - 1.0)))
    assert jnp.allclose(value, value_ref, atol=1e-3, rtol=1e-3), \
        float(jnp.max(jnp.abs(value - value_ref)))

    print("KERNEL_OK")
</pallas_src>

<mosaic_0001>
module attributes {stable_mosaic.version = 11 : i64} {
  func.func @_actor_critic_kernel(%arg0: i32, %arg1: memref<8x16xf32, #tpu.memory_space<vmem>>, %arg2: memref<16x128xf32, #tpu.memory_space<vmem>>, %arg3: memref<1x128xf32, #tpu.memory_space<vmem>>, %arg4: memref<128x128xf32, #tpu.memory_space<vmem>>, %arg5: memref<1x128xf32, #tpu.memory_space<vmem>>, %arg6: memref<8x128xf32, #tpu.memory_space<vmem>>) attributes {dimension_semantics = [#tpu.dimension_semantics<parallel>], iteration_bounds = array<i64: 1>, scalar_prefetch = 0 : i64, scratch_operands = 0 : i64, tpu.core_type = #tpu.core_type<tc>, window_params = [{transform_indices = @transform_0, window_bounds = array<i64: 8, 16>}, {pipeline_mode = #tpu.pipeline_mode<synchronous>, transform_indices = @transform_1, window_bounds = array<i64: 16, 128>}, {pipeline_mode = #tpu.pipeline_mode<synchronous>, transform_indices = @transform_2, window_bounds = array<i64: 1, 128>}, {pipeline_mode = #tpu.pipeline_mode<synchronous>, transform_indices = @transform_3, window_bounds = array<i64: 128, 128>}, {pipeline_mode = #tpu.pipeline_mode<synchronous>, transform_indices = @transform_4, window_bounds = array<i64: 1, 128>}, {transform_indices = @transform_5, window_bounds = array<i64: 8, 128>}]} {
    %c0 = arith.constant 0 : index
    %c0_0 = arith.constant 0 : index
    %0 = vector.load %arg1[%c0, %c0_0] : memref<8x16xf32, #tpu.memory_space<vmem>>, vector<8x16xf32>
    %c0_1 = arith.constant 0 : index
    %c0_2 = arith.constant 0 : index
    %1 = vector.load %arg2[%c0_1, %c0_2] : memref<16x128xf32, #tpu.memory_space<vmem>>, vector<16x128xf32>
    %cst = arith.constant dense<0.000000e+00> : vector<8x128xf32>
    %2 = tpu.matmul %0, %1, %cst {dimension_numbers = #tpu.dot_dimension_numbers<[1], [0], [0], [1], [0, 0, 1, 1], [], []>} : vector<8x16xf32>, vector<16x128xf32>, vector<8x128xf32> -> vector<8x128xf32>
    %c0_3 = arith.constant 0 : index
    %c0_4 = arith.constant 0 : index
    %3 = vector.load %arg3[%c0_3, %c0_4] : memref<1x128xf32, #tpu.memory_space<vmem>>, vector<1x128xf32>
    %4 = vector.broadcast %3 : vector<1x128xf32> to vector<8x128xf32>
    %5 = arith.addf %2, %4 : vector<8x128xf32>
    %cst_5 = arith.constant 0.000000e+00 : f32
    %6 = vector.broadcast %cst_5 : f32 to vector<8x128xf32>
    %7 = arith.maximumf %5, %6 : vector<8x128xf32>
    %c0_6 = arith.constant 0 : index
    %c0_7 = arith.constant 0 : index
    %8 = vector.load %arg4[%c0_6, %c0_7] : memref<128x128xf32, #tpu.memory_space<vmem>>, vector<128x128xf32>
    %cst_8 = arith.constant dense<0.000000e+00> : vector<8x128xf32>
    %9 = tpu.matmul %7, %8, %cst_8 {dimension_numbers = #tpu.dot_dimension_numbers<[1], [0], [0], [1], [0, 0, 1, 1], [], []>} : vector<8x128xf32>, vector<128x128xf32>, vector<8x128xf32> -> vector<8x128xf32>
    %c0_9 = arith.constant 0 : index
    %c0_10 = arith.constant 0 : index
    %10 = vector.load %arg5[%c0_9, %c0_10] : memref<1x128xf32, #tpu.memory_space<vmem>>, vector<1x128xf32>
    %11 = vector.broadcast %10 : vector<1x128xf32> to vector<8x128xf32>
    %12 = arith.addf %9, %11 : vector<8x128xf32>
    %13 = tpu.iota {dimensions = array<i32: 1>} : vector<8x128xi32>
    %c127_i32 = arith.constant 127 : i32
    %14 = vector.broadcast %c127_i32 : i32 to vector<8x128xi32>
    %15 = arith.cmpi eq, %13, %14 : vector<8x128xi32>
    %cst_11 = arith.constant -1.000000e+30 : f32
    %16 = vector.broadcast %cst_11 : f32 to vector<8x128xf32>
    %17 = arith.select %15, %16, %12 : vector<8x128xi1>, vector<8x128xf32>
    %cst_12 = arith.constant dense<0xFF800000> : vector<8xf32>
    %18 = vector.multi_reduction <maximumf>, %17, %cst_12 [1] : vector<8x128xf32> to vector<8xf32>
    %19 = vector.shape_cast %18 : vector<8xf32> to vector<8x1xf32>
    %20 = vector.broadcast %19 : vector<8x1xf32> to vector<8x128xf32>
    %21 = arith.subf %17, %20 : vector<8x128xf32>
    %22 = math.exp %21 : vector<8x128xf32>
    %cst_13 = arith.constant dense<0.000000e+00> : vector<8xf32>
    %23 = vector.multi_reduction <add>, %22, %cst_13 [1] : vector<8x128xf32> to vector<8xf32>
    %24 = vector.shape_cast %23 : vector<8xf32> to vector<8x1xf32>
    %25 = vector.broadcast %24 : vector<8x1xf32> to vector<8x128xf32>
    %26 = arith.divf %22, %25 : vector<8x128xf32>
    %27 = arith.select %15, %12, %26 : vector<8x128xi1>, vector<8x128xf32>
    %c0_14 = arith.constant 0 : index
    %c0_15 = arith.constant 0 : index
    %28 = vector.load %arg6[%c0_14, %c0_15] : memref<8x128xf32, #tpu.memory_space<vmem>>, vector<8x128xf32>
    tpu.vector_store %arg6[%c0_14, %c0_15], %27 {strides = array<i32>} : memref<8x128xf32, #tpu.memory_space<vmem>>, vector<8x128xf32>,
    return
  }
  func.func @transform_0(%arg0: i32) -> (i32, i32) {
    %c0_i32 = arith.constant 0 : i32
    %c0_i32_0 = arith.constant 0 : i32
    return %arg0, %c0_i32 : i32, i32
  }
  func.func @transform_1(%arg0: i32) -> (i32, i32) {
    %c0_i32 = arith.constant 0 : i32
    %c0_i32_0 = arith.constant 0 : i32
    %c0_i32_1 = arith.constant 0 : i32
    return %c0_i32, %c0_i32_0 : i32, i32
  }
  func.func @transform_2(%arg0: i32) -> (i32, i32) {
    %c0_i32 = arith.constant 0 : i32
    %c0_i32_0 = arith.constant 0 : i32
    %c0_i32_1 = arith.constant 0 : i32
    return %c0_i32, %c0_i32_0 : i32, i32
  }
  func.func @transform_3(%arg0: i32) -> (i32, i32) {
    %c0_i32 = arith.constant 0 : i32
    %c0_i32_0 = arith.constant 0 : i32
    %c0_i32_1 = arith.constant 0 : i32
    return %c0_i32, %c0_i32_0 : i32, i32
  }
  func.func @transform_4(%arg0: i32) -> (i32, i32) {
    %c0_i32 = arith.constant 0 : i32
    %c0_i32_0 = arith.constant 0 : i32
    %c0_i32_1 = arith.constant 0 : i32
    return %c0_i32, %c0_i32_0 : i32, i32
  }
  func.func @transform_5(%arg0: i32) -> (i32, i32) {
    %c0_i32 = arith.constant 0 : i32
    %c0_i32_0 = arith.constant 0 : i32
    return %arg0, %c0_i32 : i32, i32
  }
}

</mosaic_0001>

<bundles_post_ra>
// kernel: actor_critic_forward.1
= control target key start
LH: loop header
LB: loop body
LE: loop exit
PB: predicated region body
PF: predicated region fallthrough
CT: control target
= control target key end

     0   :  { %10 = vsyncpa [#allocation3], 0  ;;  %s314_s0 = inlined_call_operand.hbm [shape: f32[8,16], index: 0, kind: input, shape index: {}]   ;;  %s315_s1 = inlined_call_operand.hbm [shape: f32[16,128], index: 1, kind: input, shape index: {}]   ;;  %s316_s2 = inlined_call_operand.vmem [shape: f32[1,128], index: 2, kind: input, shape index: {}]   ;;  %s317_s3 = inlined_call_operand.hbm [shape: f32[128,128], index: 3, kind: input, shape index: {}]   ;;  %s318_s4 = inlined_call_operand.vmem [shape: f32[1,128], index: 4, kind: input, shape index: {}]   ;;  %s319_s5 = inlined_call_operand.vmem [shape: f32[8,128], index: 5, kind: output, shape index: {}]  }
   0x1   :  { %11 = vsyncpa [#allocation5], 0  ;;  %s27_s20 = sshll.u32 %s315_s1, 4  ;;  %s259_s21 = smov [#allocation4]   ;;  %s28_s20 = int_to_ptr.hbm [resolvable:$true] %s27_s20 }
   0x2   :  { %s29_s22 = sshll.u32 %s259_s21, 4  ;;  %s17_s25 = sshll.u32 %s314_s0, 4  ;;  %s30_s22 = int_to_ptr.vmem [resolvable:$true] %s29_s22  ;;  %s18_s25 = int_to_ptr.hbm [resolvable:$true] %s17_s25 }
   0x3   :  { %s260_s26 = smov 128   ;;  %s261_s27 = smov 8  }
   0x4   :  { %35 = dma.hbm_to_vmem [thread:$0]  %s28_s20, 256, %s30_s22, [#allocation5], %s260_s26, %s260_s26, %s261_s27  }
   0x5   :  { %s262_s28 = smov [#allocation2]   ;;  %s42_s7 = sshll.u32 %s317_s3, 4  ;;  %s43_s7 = int_to_ptr.hbm [resolvable:$true] %s42_s7 }
   0x6   :  { %s19_s29 = sshll.u32 %s262_s28, 4  ;;  %s263_s1 = smov [#allocation6]   ;;  %s20_s29 = int_to_ptr.vmem [resolvable:$true] %s19_s29 }
   0x7   :  { %22 = dma.hbm_to_vmem [thread:$0]  %s18_s25, 128, %s20_s29, [#allocation3]  }
   0x8   :  { %s44_s8 = sshll.u32 %s263_s1, 4  ;;  %s45_s8 = int_to_ptr.vmem [resolvable:$true] %s44_s8 }
   0x9   :  { %50 = dma.hbm_to_vmem [thread:$0]  %s43_s7, 2048, %s45_s8, [#allocation5], %s260_s26, %s260_s26, %s261_s27  }
   0xa   :  { %255 = dma.done.wait [#allocation3], 128  }
   0xb   :  { %256 = vsyncadd [#allocation3], 4294967168 }
   0xc   :  { %257 = dma.done.wait [#allocation5], 2304  }
   0xd   :  { %258 = vsyncadd [#allocation5], 4294964992  ;;  %v67_v0 = vld [vmem:[#allocation4 + $0x8] sm:$0xff]  ;;  %v66_v1 = vld [vmem:[#allocation4] sm:$0xff]  ;;  %vm72_vm0 = vcmask 130048   ;;  %v137_v23 = vlaneseq }
   0xe   :  { %90 = vmatpush.msra.mxu0 %v67_v0  ;;  %v65_v2 = vld [vmem:[#allocation2] sm:$0xff]  ;;  %v112_v3 = vld [vmem:[#allocation6 + $0x78] sm:$0xff]  ;;  %v111_v4 = vld [vmem:[#allocation6 + $0x70] sm:$0xff] }
   0xf   :  { %117 = vmatpush.msra.mxu1 %v112_v3  ;;  %v110_v5 = vld [vmem:[#allocation6 + $0x68] sm:$0xff]  ;;  %v109_v6 = vld [vmem:[#allocation6 + $0x60] sm:$0xff]  ;;  %v108_v7 = vld [vmem:[#allocation6 + $0x58] sm:$0xff]  ;;  %v138_v24 = vand.u32 127, %v137_v23 }
  0x10   :  { %91 = vmatpush.msra.mxu0 %v66_v1  ;;  %v107_v8 = vld [vmem:[#allocation6 + $0x50] sm:$0xff]  ;;  %v106_v9 = vld [vmem:[#allocation6 + $0x48] sm:$0xff]  ;;  %v105_v10 = vld [vmem:[#allocation6 + $0x40] sm:$0xff] }
  0x11   :  { %171 = vmatmul.msk.f32.vlgmr.msra.gmra.mxu0 %vm72_vm0, %v65_v2  ;;  %118 = vmatpush.msra.mxu1 %v111_v4  ;;  %v104_v11 = vld [vmem:[#allocation6 + $0x38] sm:$0xff]  ;;  %v103_v12 = vld [vmem:[#allocation6 + $0x30] sm:$0xff]  ;;  %v102_v13 = vld [vmem:[#allocation6 + $0x28] sm:$0xff]  ;;  %vm139_vm1 = vcmp.eq.s32.totalorder %v138_v24, 127 }
  0x12   :  { %v101_v14 = vld [vmem:[#allocation6 + $0x20] sm:$0xff]  ;;  %v100_v15 = vld [vmem:[#allocation6 + $0x18] sm:$0xff]  ;;  %v99_v16 = vld [vmem:[#allocation6 + $0x10] sm:$0xff] }
  0x13   :  { %119 = vmatpush.msra.mxu1 %v110_v5  ;;  %v98_v17 = vld [vmem:[#allocation6 + $0x8] sm:$0xff]  ;;  %v97_v18 = vld [vmem:[#allocation6] sm:$0xff] }
  0x14   :  { %v177_v19 = vld [vmem:[%s316_s2] ss:$0 sm:$0xff] }
  0x15   :  { %120 = vmatpush.msra.mxu1 %v109_v6  ;;  %v178_v25 = vld [vmem:[%s318_s4] ss:$0 sm:$0xff] }
  0x17   :  { %121 = vmatpush.msra.mxu1 %v108_v7 }
  0x19   :  { %122 = vmatpush.msra.mxu1 %v107_v8 }
  0x1b   :  { %123 = vmatpush.msra.mxu1 %v106_v9 }
  0x1d   :  { %124 = vmatpush.msra.mxu1 %v105_v10 }
  0x1f   :  { %125 = vmatpush.msra.mxu1 %v104_v11 }
  0x21   :  { %126 = vmatpush.msra.mxu1 %v103_v12 }
  0x23   :  { %127 = vmatpush.msra.mxu1 %v102_v13 }
  0x25   :  { %128 = vmatpush.msra.mxu1 %v101_v14 }
  0x27   :  { %129 = vmatpush.msra.mxu1 %v100_v15 }
  0x29   :  { %130 = vmatpush.msra.mxu1 %v99_v16 }
  0x2b   :  { %131 = vmatpush.msra.mxu1 %v98_v17 }
  0x2d   :  { %132 = vmatpush.msra.mxu1 %v97_v18 }
  0x8e   :  { %v93_v20 = vpop.f32.mrf.mxu0 }
  0x8f   :  { %v94_v21 = vadd.f32 %v177_v19, %v93_v20 }
  0x91   :  { %v96_v22 = vmax.f32 %v94_v21, 0.0 }
  0x93   :  { %133 = vmatmul.f32.vlgmr.msra.gmra.mxu1 %v96_v22 }
 0x110   :  { %v134_v26 = vpop.f32.mrf.mxu1 }
 0x111   :  { %v135_v27 = vadd.f32 %v178_v25, %v134_v26 }
 0x113   :  { %v140_v28 = vsel %vm139_vm1, -1e+30, %v135_v27 }
 0x114   :  { %141 = vmax.xlane.f32.xlu0 %v140_v28 }
 0x187   :  { %v142_v29 = vpop.xlane.xlu0 %141 }
 0x188   :  { %v143_v30 = vsub.f32 %v140_v28, %v142_v29 }
 0x18a   :  { %v144_v31 = vmul.f32 1.442695, %v143_v30 }
 0x18c   :  { %179 = vpow2.f32 %v144_v31 }
 0x192   :  { %v180_v32 = vpop.eup %179 }
 0x193   :  { %146 = vadd.xlane.f32.xlu0 %v180_v32 }
 0x206   :  { %v147_v33 = vpop.xlane.xlu0 %146 }
 0x207   :  { %181 = vrcp.f32 %v147_v33  ;;  %v159_v37 = vand.u32 2147483648, %v147_v33  ;;  %v157_v39 = vand.u32 2147483647, %v147_v33  ;;  %vm153_vm3 = vweird.f32 %v147_v33 }
 0x209   :  { %v160_v41 = vor.u32 1.1754944e-38, %v159_v37  ;;  %vm158_vm5 = vcmp.eq.f32.partialorder %v157_v39, 8.507059e+37 }
 0x20d   :  { %v182_v34 = vpop.eup %181 }
 0x20e   :  { %v149_v35 = vmul.f32 %v182_v34, %v147_v33  ;;  %vm154_vm2 = vweird.f32 %v182_v34 }
 0x20f   :  { %vm155_vm4 = vmor %vm153_vm3, %vm154_vm2 }
 0x210   :  { %v150_v36 = vsub.f32 1.0, %v149_v35 }
 0x212   :  { %v151_v38 = vmul.f32 %v182_v34, %v150_v36 }
 0x214   :  { %v152_v40 = vadd.f32 %v182_v34, %v151_v38 }
 0x216   :  { %v156_v42 = vsel %vm155_vm4, %v182_v34, %v152_v40 }
 0x217   :  { %v161_v43 = vsel %vm158_vm5, %v160_v41, %v156_v42 }
 0x218   :  { %v162_v44 = vmul.f32 %v180_v32, %v161_v43 }
 0x21a   :  { %v163_v45 = vsel %vm139_vm1, %v135_v27, %v162_v44 }
 0x21b   :  { %164 = vst [vmem:[%s319_s5] sm:$0xff] %v163_v45 }
 0x21c   :  { %169 = vsyncpa [#allocation3], 1 }
 0x21d   :  { %170 = vsyncpa [#allocation5], 1 }

</bundles_post_ra>
